<compile_context>
chip_gen: v5e
topology: v5e:2x2
jax: 0.10.0
libtpu: 0.0.40
codegen_flags: <defaults>
</compile_context>

<pallas_src>
import functools
import math

import jax
import jax.numpy as jnp
from jax import lax
from jax.experimental import pallas as pl
from jax.experimental.pallas import tpu as pltpu


def _round_up(x, m):
    return ((x + m - 1) // m) * m


def _choose_tn(n, target):
    """Largest multiple-of-128 divisor of n that is <= target, else n (no tiling)."""
    if n <= target:
        return n
    start = (target // 128) * 128
    for cand in range(start, 127, -128):
        if n % cand == 0:
            return cand
    return n


def _gelu(x, approximate):
    if approximate:
        # tanh approximation -> EUP (transcendental unit), frees VALU slots.
        return jax.nn.gelu(x, approximate=True)
    # PyTorch nn.GELU() default ("none"): 0.5 * x * (1 + erf(x / sqrt(2)))
    return 0.5 * x * (1.0 + lax.erf(x * (1.0 / math.sqrt(2.0))))


def _projector_kernel(x_ref, w1_ref, b1_ref, w2_ref, b2_ref, o_ref, h_ref,
                      *, approximate_gelu=False):
    # x_ref:  (tm, D)     w1_ref: (D, H)    b1_ref: (1, H)   [f32]
    # w2_ref: (H, tn)     b2_ref: (1, tn)   [f32]
    # o_ref:  (tm, tn)    h_ref:  (tm, H) VMEM scratch (compute dtype)
    #
    # Grid is (row_tiles, col_tiles) with the column axis innermost; the GELU
    # intermediate for a row tile is computed once (j == 0) and reused for all
    # output-column tiles of that row tile.
    @pl.when(pl.program_id(1) == 0)
    def _():
        h = jnp.dot(x_ref[...], w1_ref[...], preferred_element_type=jnp.float32)
        h = h + b1_ref[...]                      # f32 bias, broadcast (1,H)->(tm,H)
        h = _gelu(h, approximate_gelu)
        h_ref[...] = h.astype(h_ref.dtype)

    y = jnp.dot(h_ref[...], w2_ref[...], preferred_element_type=jnp.float32)
    o_ref[...] = (y + b2_ref[...]).astype(o_ref.dtype)


def multimodal_projector(x, w1, b1, w2, b2, *, tm=256, tn=1024,
                         compute_dtype=None, approximate_gelu=False,
                         vmem_limit_bytes=48 * 1024 * 1024):
    """x: (..., D); weights stored (in_features, out_features); returns (..., n_embd)."""
    orig_shape = x.shape
    D = orig_shape[-1]
    H = w1.shape[1]            # 4 * D
    N = w2.shape[1]            # n_embd
    out_dtype = x.dtype

    x2 = x.reshape(-1, D)
    M = x2.shape[0]

    # Optional single conversion (e.g. bf16) in the wrapper; the kernel never casts.
    if compute_dtype is not None:
        x2 = x2.astype(compute_dtype)
        w1 = w1.astype(compute_dtype)
        w2 = w2.astype(compute_dtype)
    b1f = b1.astype(jnp.float32).reshape(1, H)
    b2f = b2.astype(jnp.float32).reshape(1, N)

    # Row tile: MXU-friendly (big), multiple of 8, never bigger than needed.
    tm_eff = _round_up(min(tm, _round_up(M, 8)), 8)
    m_pad = _round_up(M, tm_eff)
    if m_pad != M:
        x2 = jnp.pad(x2, ((0, m_pad - M), (0, 0)))

    # Output-column tile: only tile when N is large and 128-divisible (keeps the
    # W2 working set bounded for v7x's 64 MiB VMEM, stores stay lane-dense).
    tn_eff = _choose_tn(N, tn)
    n_i = m_pad // tm_eff
    n_j = N // tn_eff

    kernel = functools.partial(_projector_kernel, approximate_gelu=approximate_gelu)

    def run(single_buffer):
        def spec(shape, index_map, const=False):
            if single_buffer and const:
                # Constant blocks: skip double buffering to halve their VMEM footprint.
                return pl.BlockSpec(shape, index_map, pipeline_mode=pl.Buffered(1))
            return pl.BlockSpec(shape, index_map)

        in_specs = [
            spec((tm_eff, D), lambda i, j: (i, 0)),                      # x rows
            spec((D, H), lambda i, j: (0, 0), const=True),               # W1 (resident)
            spec((1, H), lambda i, j: (0, 0), const=True),               # b1 (f32)
            spec((H, tn_eff), lambda i, j: (0, j), const=(n_j == 1)),    # W2 (N-tiled)
            spec((1, tn_eff), lambda i, j: (0, j), const=(n_j == 1)),    # b2 (f32)
        ]
        out_spec = pl.BlockSpec((tm_eff, tn_eff), lambda i, j: (i, j))

        return pl.pallas_call(
            kernel,
            out_shape=jax.ShapeDtypeStruct((m_pad, N), out_dtype),
            grid_spec=pltpu.PrefetchScalarGridSpec(
                num_scalar_prefetch=0,
                grid=(n_i, n_j),
                in_specs=in_specs,
                out_specs=out_spec,
                scratch_shapes=[pltpu.VMEM((tm_eff, H), x2.dtype)],  # GELU intermediate
            ),
            compiler_params=pltpu.CompilerParams(
                dimension_semantics=("parallel", "arbitrary"),
                vmem_limit_bytes=vmem_limit_bytes,
            ),
        )(x2, w1, b1f, w2, b2f)

    try:
        out = run(single_buffer=True)
    except Exception:  # pragma: no cover - fallback if Buffered(1) is unsupported
        out = run(single_buffer=False)

    if m_pad != M:
        out = out[:M]
    return out.reshape(*orig_shape[:-1], N)


def init_params(key, image_embed_dim, n_embd, dtype=jnp.float32):
    """Mimics PyTorch Linear default init: U(-1/sqrt(fan_in), 1/sqrt(fan_in))."""
    D = image_embed_dim
    H = 4 * D
    k1, k2, k3, k4 = jax.random.split(key, 4)
    lim1 = 1.0 / math.sqrt(D)
    lim2 = 1.0 / math.sqrt(H)
    # stored as (in_features, out_features)
    w1 = jax.random.uniform(k1, (D, H), dtype, minval=-lim1, maxval=lim1)
    b1 = jax.random.uniform(k2, (H,), dtype, minval=-lim1, maxval=lim1)
    w2 = jax.random.uniform(k3, (H, n_embd), dtype, minval=-lim2, maxval=lim2)
    b2 = jax.random.uniform(k4, (n_embd,), dtype, minval=-lim2, maxval=lim2)
    return w1, b1, w2, b2


def _reference(x, w1, b1, w2, b2):
    h = _gelu(x @ w1 + b1, approximate=False)
    return h @ w2 + b2


if __name__ == "__main__":
    # Small, module-consistent shapes: batch=2, seq=8, image_embed_dim=32, n_embd=64.
    batch, seq = 2, 8
    image_embed_dim = 32
    n_embd = 64

    key = jax.random.PRNGKey(0)
    kx, kp = jax.random.split(key)
    x = jax.random.normal(kx, (batch, seq, image_embed_dim), dtype=jnp.float32)
    w1, b1, w2, b2 = init_params(kp, image_embed_dim, n_embd)

    ref = _reference(x.reshape(-1, image_embed_dim), w1, b1, w2, b2)
    ref = ref.reshape(batch, seq, n_embd)

    # Exact path (f32 storage dtype, exact-erf GELU) — matches PyTorch semantics.
    out = multimodal_projector(x, w1, b1, w2, b2)
    out = jax.block_until_ready(out)
    assert out.shape == (batch, seq, n_embd)
    assert jnp.allclose(out, ref, atol=1e-5, rtol=1e-5), "mismatch vs reference (f32)"

    # Fast path (bf16 operands into the MXU, f32 accumulation, tanh GELU).
    out_fast = multimodal_projector(x, w1, b1, w2, b2,
                                    compute_dtype=jnp.bfloat16,
                                    approximate_gelu=True)
    out_fast = jax.block_until_ready(out_fast)
    assert out_fast.shape == (batch, seq, n_embd)
    assert jnp.allclose(out_fast.astype(jnp.float32), ref, atol=1e-1, rtol=1e-1), \
        "mismatch vs reference (bf16 fast path)"

    print("KERNEL_OK")
</pallas_src>

<mosaic_0001>
module attributes {stable_mosaic.version = 11 : i64} {
  func.func @_projector_kernel(%arg0: i32, %arg1: i32, %arg2: memref<16x32xf32, #tpu.memory_space<vmem>>, %arg3: memref<32x128xf32, #tpu.memory_space<vmem>>, %arg4: memref<1x128xf32, #tpu.memory_space<vmem>>, %arg5: memref<128x64xf32, #tpu.memory_space<vmem>>, %arg6: memref<1x64xf32, #tpu.memory_space<vmem>>, %arg7: memref<16x64xf32, #tpu.memory_space<vmem>>, %arg8: memref<16x128xf32, #tpu.memory_space<vmem>>) attributes {dimension_semantics = [#tpu.dimension_semantics<parallel>, #tpu.dimension_semantics<arbitrary>], iteration_bounds = array<i64: 1, 1>, scalar_prefetch = 0 : i64, scratch_operands = 1 : i64, tpu.core_type = #tpu.core_type<tc>, window_params = [{transform_indices = @transform_0, window_bounds = array<i64: 16, 32>}, {pipeline_mode = #tpu.pipeline_mode<synchronous>, transform_indices = @transform_1, window_bounds = array<i64: 32, 128>}, {pipeline_mode = #tpu.pipeline_mode<synchronous>, transform_indices = @transform_2, window_bounds = array<i64: 1, 128>}, {pipeline_mode = #tpu.pipeline_mode<synchronous>, transform_indices = @transform_3, window_bounds = array<i64: 128, 64>}, {pipeline_mode = #tpu.pipeline_mode<synchronous>, transform_indices = @transform_4, window_bounds = array<i64: 1, 64>}, {transform_indices = @transform_5, window_bounds = array<i64: 16, 64>}]} {
    %c0_i32 = arith.constant 0 : i32
    %0 = arith.cmpi eq, %arg1, %c0_i32 : i32
    %1 = arith.extui %0 : i1 to i32
    %c0_i32_0 = arith.constant 0 : i32
    %2 = arith.cmpi ne, %1, %c0_i32_0 : i32
    scf.if %2 {
      %c0_8 = arith.constant 0 : index
      %c0_9 = arith.constant 0 : index
      %10 = vector.load %arg2[%c0_8, %c0_9] : memref<16x32xf32, #tpu.memory_space<vmem>>, vector<16x32xf32>
      %c0_10 = arith.constant 0 : index
      %c0_11 = arith.constant 0 : index
      %11 = vector.load %arg3[%c0_10, %c0_11] : memref<32x128xf32, #tpu.memory_space<vmem>>, vector<32x128xf32>
      %cst_12 = arith.constant dense<0.000000e+00> : vector<16x128xf32>
      %12 = tpu.matmul %10, %11, %cst_12 {dimension_numbers = #tpu.dot_dimension_numbers<[1], [0], [0], [1], [0, 0, 1, 1], [], []>} : vector<16x32xf32>, vector<32x128xf32>, vector<16x128xf32> -> vector<16x128xf32>
      %c0_13 = arith.constant 0 : index
      %c0_14 = arith.constant 0 : index
      %13 = vector.load %arg4[%c0_13, %c0_14] : memref<1x128xf32, #tpu.memory_space<vmem>>, vector<1x128xf32>
      %14 = vector.broadcast %13 : vector<1x128xf32> to vector<16x128xf32>
      %15 = arith.addf %12, %14 : vector<16x128xf32>
      %cst_15 = arith.constant 5.000000e-01 : f32
      %16 = vector.broadcast %cst_15 : f32 to vector<16x128xf32>
      %17 = arith.mulf %16, %15 : vector<16x128xf32>
      %cst_16 = arith.constant 0.707106769 : f32
      %18 = vector.broadcast %cst_16 : f32 to vector<16x128xf32>
      %19 = arith.mulf %15, %18 : vector<16x128xf32>
      %20 = math.erf %19 : vector<16x128xf32>
      %cst_17 = arith.constant 1.000000e+00 : f32
      %21 = vector.broadcast %cst_17 : f32 to vector<16x128xf32>
      %22 = arith.addf %21, %20 : vector<16x128xf32>
      %23 = arith.mulf %17, %22 : vector<16x128xf32>
      %c0_18 = arith.constant 0 : index
      %c0_19 = arith.constant 0 : index
      %24 = vector.load %arg8[%c0_18, %c0_19] : memref<16x128xf32, #tpu.memory_space<vmem>>, vector<16x128xf32>
      tpu.vector_store %arg8[%c0_18, %c0_19], %23 {strides = array<i32>} : memref<16x128xf32, #tpu.memory_space<vmem>>, vector<16x128xf32>,
    } else {
    }
    %c0 = arith.constant 0 : index
    %c0_1 = arith.constant 0 : index
    %3 = vector.load %arg8[%c0, %c0_1] : memref<16x128xf32, #tpu.memory_space<vmem>>, vector<16x128xf32>
    %c0_2 = arith.constant 0 : index
    %c0_3 = arith.constant 0 : index
    %4 = vector.load %arg5[%c0_2, %c0_3] : memref<128x64xf32, #tpu.memory_space<vmem>>, vector<128x64xf32>
    %cst = arith.constant dense<0.000000e+00> : vector<16x64xf32>
    %5 = tpu.matmul %3, %4, %cst {dimension_numbers = #tpu.dot_dimension_numbers<[1], [0], [0], [1], [0, 0, 1, 1], [], []>} : vector<16x128xf32>, vector<128x64xf32>, vector<16x64xf32> -> vector<16x64xf32>
    %c0_4 = arith.constant 0 : index
    %c0_5 = arith.constant 0 : index
    %6 = vector.load %arg6[%c0_4, %c0_5] : memref<1x64xf32, #tpu.memory_space<vmem>>, vector<1x64xf32>
    %7 = vector.broadcast %6 : vector<1x64xf32> to vector<16x64xf32>
    %8 = arith.addf %5, %7 : vector<16x64xf32>
    %c0_6 = arith.constant 0 : index
    %c0_7 = arith.constant 0 : index
    %9 = vector.load %arg7[%c0_6, %c0_7] : memref<16x64xf32, #tpu.memory_space<vmem>>, vector<16x64xf32>
    tpu.vector_store %arg7[%c0_6, %c0_7], %8 {strides = array<i32>} : memref<16x64xf32, #tpu.memory_space<vmem>>, vector<16x64xf32>,
    return
  }
  func.func @transform_0(%arg0: i32, %arg1: i32) -> (i32, i32) {
    %c0_i32 = arith.constant 0 : i32
    %c0_i32_0 = arith.constant 0 : i32
    return %arg0, %c0_i32 : i32, i32
  }
  func.func @transform_1(%arg0: i32, %arg1: i32) -> (i32, i32) {
    %c0_i32 = arith.constant 0 : i32
    %c0_i32_0 = arith.constant 0 : i32
    %c0_i32_1 = arith.constant 0 : i32
    return %c0_i32, %c0_i32_0 : i32, i32
  }
  func.func @transform_2(%arg0: i32, %arg1: i32) -> (i32, i32) {
    %c0_i32 = arith.constant 0 : i32
    %c0_i32_0 = arith.constant 0 : i32
    %c0_i32_1 = arith.constant 0 : i32
    return %c0_i32, %c0_i32_0 : i32, i32
  }
  func.func @transform_3(%arg0: i32, %arg1: i32) -> (i32, i32) {
    %c0_i32 = arith.constant 0 : i32
    %c0_i32_0 = arith.constant 0 : i32
    return %c0_i32, %arg1 : i32, i32
  }
  func.func @transform_4(%arg0: i32, %arg1: i32) -> (i32, i32) {
    %c0_i32 = arith.constant 0 : i32
    %c0_i32_0 = arith.constant 0 : i32
    return %c0_i32, %arg1 : i32, i32
  }
  func.func @transform_5(%arg0: i32, %arg1: i32) -> (i32, i32) {
    %c0_i32 = arith.constant 0 : i32
    return %arg0, %arg1 : i32, i32
  }
}

module attributes {stable_mosaic.version = 11 : i64} {
  func.func @_projector_kernel(%arg0: i32, %arg1: i32, %arg2: memref<16x32xf32, #tpu.memory_space<vmem>>, %arg3: memref<32x128xf32, #tpu.memory_space<vmem>>, %arg4: memref<1x128xf32, #tpu.memory_space<vmem>>, %arg5: memref<128x64xf32, #tpu.memory_space<vmem>>, %arg6: memref<1x64xf32, #tpu.memory_space<vmem>>, %arg7: memref<16x64xf32, #tpu.memory_space<vmem>>, %arg8: memref<16x128xf32, #tpu.memory_space<vmem>>) attributes {dimension_semantics = [#tpu.dimension_semantics<parallel>, #tpu.dimension_semantics<arbitrary>], iteration_bounds = array<i64: 1, 1>, scalar_prefetch = 0 : i64, scratch_operands = 1 : i64, tpu.core_type = #tpu.core_type<tc>, window_params = [{transform_indices = @transform_0, window_bounds = array<i64: 16, 32>}, {pipeline_mode = #tpu.pipeline_mode<synchronous>, transform_indices = @transform_1, window_bounds = array<i64: 32, 128>}, {pipeline_mode = #tpu.pipeline_mode<synchronous>, transform_indices = @transform_2, window_bounds = array<i64: 1, 128>}, {transform_indices = @transform_3, window_bounds = array<i64: 128, 64>}, {transform_indices = @transform_4, window_bounds = array<i64: 1, 64>}, {transform_indices = @transform_5, window_bounds = array<i64: 16, 64>}]} {
    %c0_i32 = arith.constant 0 : i32
    %0 = arith.cmpi eq, %arg1, %c0_i32 : i32
    %1 = arith.extui %0 : i1 to i32
    %c0_i32_0 = arith.constant 0 : i32
    %2 = arith.cmpi ne, %1, %c0_i32_0 : i32
    scf.if %2 {
      %c0_8 = arith.constant 0 : index
      %c0_9 = arith.constant 0 : index
      %10 = vector.load %arg2[%c0_8, %c0_9] : memref<16x32xf32, #tpu.memory_space<vmem>>, vector<16x32xf32>
      %c0_10 = arith.constant 0 : index
      %c0_11 = arith.constant 0 : index
      %11 = vector.load %arg3[%c0_10, %c0_11] : memref<32x128xf32, #tpu.memory_space<vmem>>, vector<32x128xf32>
      %cst_12 = arith.constant dense<0.000000e+00> : vector<16x128xf32>
      %12 = tpu.matmul %10, %11, %cst_12 {dimension_numbers = #tpu.dot_dimension_numbers<[1], [0], [0], [1], [0, 0, 1, 1], [], []>} : vector<16x32xf32>, vector<32x128xf32>, vector<16x128xf32> -> vector<16x128xf32>
      %c0_13 = arith.constant 0 : index
      %c0_14 = arith.constant 0 : index
      %13 = vector.load %arg4[%c0_13, %c0_14] : memref<1x128xf32, #tpu.memory_space<vmem>>, vector<1x128xf32>
      %14 = vector.broadcast %13 : vector<1x128xf32> to vector<16x128xf32>
      %15 = arith.addf %12, %14 : vector<16x128xf32>
      %cst_15 = arith.constant 5.000000e-01 : f32
      %16 = vector.broadcast %cst_15 : f32 to vector<16x128xf32>
      %17 = arith.mulf %16, %15 : vector<16x128xf32>
      %cst_16 = arith.constant 0.707106769 : f32
      %18 = vector.broadcast %cst_16 : f32 to vector<16x128xf32>
      %19 = arith.mulf %15, %18 : vector<16x128xf32>
      %20 = math.erf %19 : vector<16x128xf32>
      %cst_17 = arith.constant 1.000000e+00 : f32
      %21 = vector.broadcast %cst_17 : f32 to vector<16x128xf32>
      %22 = arith.addf %21, %20 : vector<16x128xf32>
      %23 = arith.mulf %17, %22 : vector<16x128xf32>
      %c0_18 = arith.constant 0 : index
      %c0_19 = arith.constant 0 : index
      %24 = vector.load %arg8[%c0_18, %c0_19] : memref<16x128xf32, #tpu.memory_space<vmem>>, vector<16x128xf32>
      tpu.vector_store %arg8[%c0_18, %c0_19], %23 {strides = array<i32>} : memref<16x128xf32, #tpu.memory_space<vmem>>, vector<16x128xf32>,
    } else {
    }
    %c0 = arith.constant 0 : index
    %c0_1 = arith.constant 0 : index
    %3 = vector.load %arg8[%c0, %c0_1] : memref<16x128xf32, #tpu.memory_space<vmem>>, vector<16x128xf32>
    %c0_2 = arith.constant 0 : index
    %c0_3 = arith.constant 0 : index
    %4 = vector.load %arg5[%c0_2, %c0_3] : memref<128x64xf32, #tpu.memory_space<vmem>>, vector<128x64xf32>
    %cst = arith.constant dense<0.000000e+00> : vector<16x64xf32>
    %5 = tpu.matmul %3, %4, %cst {dimension_numbers = #tpu.dot_dimension_numbers<[1], [0], [0], [1], [0, 0, 1, 1], [], []>} : vector<16x128xf32>, vector<128x64xf32>, vector<16x64xf32> -> vector<16x64xf32>
    %c0_4 = arith.constant 0 : index
    %c0_5 = arith.constant 0 : index
    %6 = vector.load %arg6[%c0_4, %c0_5] : memref<1x64xf32, #tpu.memory_space<vmem>>, vector<1x64xf32>
    %7 = vector.broadcast %6 : vector<1x64xf32> to vector<16x64xf32>
    %8 = arith.addf %5, %7 : vector<16x64xf32>
    %c0_6 = arith.constant 0 : index
    %c0_7 = arith.constant 0 : index
    %9 = vector.load %arg7[%c0_6, %c0_7] : memref<16x64xf32, #tpu.memory_space<vmem>>, vector<16x64xf32>
    tpu.vector_store %arg7[%c0_6, %c0_7], %8 {strides = array<i32>} : memref<16x64xf32, #tpu.memory_space<vmem>>, vector<16x64xf32>,
    return
  }
  func.func @transform_0(%arg0: i32, %arg1: i32) -> (i32, i32) {
    %c0_i32 = arith.constant 0 : i32
    %c0_i32_0 = arith.constant 0 : i32
    return %arg0, %c0_i32 : i32, i32
  }
  func.func @transform_1(%arg0: i32, %arg1: i32) -> (i32, i32) {
    %c0_i32 = arith.constant 0 : i32
    %c0_i32_0 = arith.constant 0 : i32
    %c0_i32_1 = arith.constant 0 : i32
    return %c0_i32, %c0_i32_0 : i32, i32
  }
  func.func @transform_2(%arg0: i32, %arg1: i32) -> (i32, i32) {
    %c0_i32 = arith.constant 0 : i32
    %c0_i32_0 = arith.constant 0 : i32
    %c0_i32_1 = arith.constant 0 : i32
    return %c0_i32, %c0_i32_0 : i32, i32
  }
  func.func @transform_3(%arg0: i32, %arg1: i32) -> (i32, i32) {
    %c0_i32 = arith.constant 0 : i32
    %c0_i32_0 = arith.constant 0 : i32
    return %c0_i32, %arg1 : i32, i32
  }
  func.func @transform_4(%arg0: i32, %arg1: i32) -> (i32, i32) {
    %c0_i32 = arith.constant 0 : i32
    %c0_i32_0 = arith.constant 0 : i32
    return %c0_i32, %arg1 : i32, i32
  }
  func.func @transform_5(%arg0: i32, %arg1: i32) -> (i32, i32) {
    %c0_i32 = arith.constant 0 : i32
    return %arg0, %arg1 : i32, i32
  }
}

</mosaic_0001>

<bundles_post_ra>
// kernel: tpu_custom_call.1
= control target key start
LH: loop header
LB: loop body
LE: loop exit
PB: predicated region body
PF: predicated region fallthrough
CT: control target
= control target key end

     0   :  { %s414_s0 = inlined_call_operand.vmem [shape: f32[16,32], index: 0, kind: input, shape index: {}]   ;;  %s415_s1 = inlined_call_operand.vmem [shape: f32[32,128], index: 1, kind: input, shape index: {}]   ;;  %s416_s2 = inlined_call_operand.vmem [shape: f32[1,128], index: 2, kind: input, shape index: {}]   ;;  %s417_s3 = inlined_call_operand.vmem [shape: f32[128,64], index: 3, kind: input, shape index: {}]   ;;  %s418_s4 = inlined_call_operand.vmem [shape: f32[1,64], index: 4, kind: input, shape index: {}]   ;;  %s419_s5 = inlined_call_operand.hbm [shape: f32[16,64], index: 5, kind: output, shape index: {}]  }
   0x1   :  { %v30_v0 = vld [vmem:[%s415_s1 + $0x18] sm:$0xff]  ;;  %v29_v1 = vld [vmem:[%s415_s1 + $0x10] sm:$0xff]  ;;  %v28_v2 = vld [vmem:[%s415_s1 + $0x8] sm:$0xff] }
   0x2   :  { %54 = vmatpush.msra.mxu0 %v30_v0 }
   0x4   :  { %55 = vmatpush.msra.mxu0 %v29_v1 }
   0x5   :  { %10 = vsyncpa [#allocation4], 0  ;;  %v27_v3 = vld [vmem:[%s415_s1] sm:$0xff]  ;;  %vm35_vm0 = vcmask 261120   ;;  %v26_v5 = vld [vmem:[%s414_s0 + $0x8] sm:$0xff]  ;;  %vm200_vm9 = vcmask 523264  }
   0x6   :  { %56 = vmatpush.msra.mxu0 %v28_v2  ;;  %v25_v4 = vld [vmem:[%s414_s0] sm:$0xff]  ;;  %v172_v6 = vld [vmem:[%s417_s3 + $0x78] sm:$0xff]  ;;  %v171_v7 = vld [vmem:[%s417_s3 + $0x70] sm:$0xff]  ;;  %s276_s10 = smov [#allocation3]   ;;  %s209_s14 = sshll.u32 %s419_s5, 4  ;;  %s210_s14 = int_to_ptr.hbm [resolvable:$true] %s209_s14 }
   0x7   :  { %177 = vmatpush.msra.mxu1 %v172_v6  ;;  %225 = vmatpush.msra.mxu2 %v172_v6  ;;  %v170_v8 = vld [vmem:[%s417_s3 + $0x68] sm:$0xff]  ;;  %v169_v9 = vld [vmem:[%s417_s3 + $0x60] sm:$0xff]  ;;  %v168_v11 = vld [vmem:[%s417_s3 + $0x58] sm:$0xff]  ;;  %s207_s11 = sshll.u32 %s276_s10, 4  ;;  %s277_s15 = smov 128   ;;  %s208_s11 = int_to_ptr.vmem [resolvable:$true] %s207_s11 }
   0x8   :  { %57 = vmatpush.msra.mxu0 %v27_v3  ;;  %v244_v10 = vld [vmem:[%s416_s2] ss:$0 sm:$0xff]  ;;  %v167_v13 = vld [vmem:[%s417_s3 + $0x50] sm:$0xff]  ;;  %v166_v15 = vld [vmem:[%s417_s3 + $0x48] sm:$0xff]  ;;  %s278_s16 = smov 8  }
   0x9   :  { %221 = vmatmul.msk.f32.vlgmr.msra.gmra.mxu0 %vm35_vm0, %v25_v4  ;;  %178 = vmatpush.msra.mxu1 %v171_v7  ;;  %v165_v17 = vld [vmem:[%s417_s3 + $0x40] sm:$0xff]  ;;  %v164_v19 = vld [vmem:[%s417_s3 + $0x38] sm:$0xff]  ;;  %v163_v20 = vld [vmem:[%s417_s3 + $0x30] sm:$0xff] }
   0xa   :  { %226 = vmatpush.msra.mxu2 %v171_v7  ;;  %v162_v23 = vld [vmem:[%s417_s3 + $0x28] sm:$0xff]  ;;  %v161_v27 = vld [vmem:[%s417_s3 + $0x20] sm:$0xff]  ;;  %v160_v30 = vld [vmem:[%s417_s3 + $0x18] sm:$0xff] }
   0xb   :  { %179 = vmatpush.msra.mxu1 %v170_v8  ;;  %v159_v34 = vld [vmem:[%s417_s3 + $0x10] sm:$0xff]  ;;  %v158_v37 = vld [vmem:[%s417_s3 + $0x8] sm:$0xff]  ;;  %v157_v42 = vld [vmem:[%s417_s3] sm:$0xff] }
   0xc   :  { %227 = vmatpush.msra.mxu2 %v170_v8 }
   0xd   :  { %180 = vmatpush.msra.mxu1 %v169_v9 }
   0xe   :  { %228 = vmatpush.msra.mxu2 %v169_v9 }
   0xf   :  { %181 = vmatpush.msra.mxu1 %v168_v11 }
  0x10   :  { %229 = vmatpush.msra.mxu2 %v168_v11 }
  0x11   :  { %222 = vmatmul.msk.f32.gmra.mxu0 %vm35_vm0, %v26_v5  ;;  %182 = vmatpush.msra.mxu1 %v167_v13 }
  0x12   :  { %230 = vmatpush.msra.mxu2 %v167_v13 }
  0x13   :  { %183 = vmatpush.msra.mxu1 %v166_v15 }
  0x14   :  { %231 = vmatpush.msra.mxu2 %v166_v15 }
  0x15   :  { %184 = vmatpush.msra.mxu1 %v165_v17 }
  0x16   :  { %232 = vmatpush.msra.mxu2 %v165_v17 }
  0x17   :  { %185 = vmatpush.msra.mxu1 %v164_v19 }
  0x18   :  { %233 = vmatpush.msra.mxu2 %v164_v19 }
  0x19   :  { %186 = vmatpush.msra.mxu1 %v163_v20 }
  0x1a   :  { %234 = vmatpush.msra.mxu2 %v163_v20 }
  0x1b   :  { %187 = vmatpush.msra.mxu1 %v162_v23 }
  0x1c   :  { %235 = vmatpush.msra.mxu2 %v162_v23 }
  0x1d   :  { %188 = vmatpush.msra.mxu1 %v161_v27 }
  0x1e   :  { %236 = vmatpush.msra.mxu2 %v161_v27 }
  0x1f   :  { %189 = vmatpush.msra.mxu1 %v160_v30 }
  0x20   :  { %237 = vmatpush.msra.mxu2 %v160_v30 }
  0x21   :  { %190 = vmatpush.msra.mxu1 %v159_v34 }
  0x22   :  { %238 = vmatpush.msra.mxu2 %v159_v34 }
  0x23   :  { %191 = vmatpush.msra.mxu1 %v158_v37 }
  0x24   :  { %239 = vmatpush.msra.mxu2 %v158_v37 }
  0x25   :  { %192 = vmatpush.msra.mxu1 %v157_v42 }
  0x26   :  { %240 = vmatpush.msra.mxu2 %v157_v42 }
  0x86   :  { %v59_v12 = vpop.f32.mrf.mxu0 }
  0x87   :  { %v348_v14 = vadd.f32 %v244_v10, %v59_v12 }
  0x89   :  { %v354_v16 = vmul.f32 0.70710677, %v348_v14 }
  0x8b   :  { %v69_v18 = vmul.f32 %v354_v16, %v354_v16 }
  0x8d   :  { %v367_v21 = vmin.f32 %v69_v18, 16.0 }
  0x8e   :  { %v62_v22 = vpop.f32.mrf.mxu0 }
  0x8f   :  { %v71_v24 = vmul.f32 2.1237322e-06, %v367_v21  ;;  %v373_v25 = vadd.f32 %v244_v10, %v62_v22  ;;  %v82_v26 = vmul.f32 3.8918573e-05, %v367_v21 }
  0x91   :  { %v72_v28 = vadd.f32 0.00028619796, %v71_v24  ;;  %v380_v29 = vmul.f32 0.70710677, %v373_v25  ;;  %v83_v31 = vadd.f32 0.001143296, %v82_v26 }
  0x93   :  { %v73_v32 = vmul.f32 %v72_v28, %v367_v21  ;;  %v109_v33 = vmul.f32 %v380_v29, %v380_v29  ;;  %v84_v35 = vmul.f32 %v83_v31, %v367_v21 }
  0x95   :  { %v110_v36 = vmin.f32 %v109_v33, 16.0  ;;  %v85_v38 = vadd.f32 0.014752088, %v84_v35  ;;  %v74_v39 = vadd.f32 0.0036580483, %v73_v32  ;;  %v65_v33 = vmul.f32 0.5, %v348_v14 }
  0x96   :  { %v245_v14 = vld [vmem:[%s418_s4] ss:$0 sm:$0xff] }
  0x97   :  { %v111_v40 = vmul.f32 2.1237322e-06, %v110_v36  ;;  %v122_v41 = vmul.f32 3.8918573e-05, %v110_v36  ;;  %v86_v43 = vmul.f32 %v85_v38, %v367_v21  ;;  %v75_v47 = vmul.f32 %v74_v39, %v367_v21 }
  0x99   :  { %v112_v44 = vadd.f32 0.00028619796, %v111_v40  ;;  %v123_v45 = vadd.f32 0.001143296, %v122_v41  ;;  %v87_v46 = vadd.f32 0.112945676, %v86_v43 }
  0x9a   :  { %v76_v54 = vadd.f32 0.05243302, %v75_v47  ;;  %v66_v41 = vmul.f32 0.5, %v373_v25 }
  0x9b   :  { %v113_v48 = vmul.f32 %v112_v44, %v110_v36  ;;  %v124_v49 = vmul.f32 %v123_v45, %v110_v36  ;;  %v88_v50 = vmul.f32 %v87_v46, %v367_v21 }
  0x9c   :  { %v77_v60 = vmul.f32 %v76_v54, %v367_v21 }
  0x9d   :  { %v125_v51 = vadd.f32 0.014752088, %v124_v49  ;;  %v114_v52 = vadd.f32 0.0036580483, %v113_v48  ;;  %v89_v53 = vadd.f32 0.4994258, %v88_v50 }
  0x9e   :  { %v78_v0 = vadd.f32 0.18741608, %v77_v60 }
  0x9f   :  { %v126_v55 = vmul.f32 %v125_v51, %v110_v36  ;;  %v90_v56 = vmul.f32 %v89_v53, %v367_v21  ;;  %v115_v58 = vmul.f32 %v114_v52, %v110_v36 }
  0xa0   :  { %v79_v5 = vmul.f32 %v78_v0, %v367_v21 }
  0xa1   :  { %v127_v57 = vadd.f32 0.112945676, %v126_v55  ;;  %v91_v59 = vadd.f32 1.0, %v90_v56  ;;  %v116_v63 = vadd.f32 0.05243302, %v115_v58 }
  0xa2   :  { %v80_v10 = vadd.f32 1.1283791, %v79_v5 }
  0xa3   :  { %v128_v61 = vmul.f32 %v127_v57, %v110_v36  ;;  %246 = vrcp.f32 %v91_v59  ;;  %v117_v4 = vmul.f32 %v116_v63, %v110_v36  ;;  %v103_v9 = vand.u32 2147483648, %v91_v59 }
  0xa4   :  { %v101_v12 = vand.u32 2147483647, %v91_v59  ;;  %vm97_vm2 = vweird.f32 %v91_v59  ;;  %v81_v20 = vmul.f32 %v80_v10, %v354_v16 }
  0xa5   :  { %v129_v62 = vadd.f32 0.4994258, %v128_v61  ;;  %v118_v8 = vadd.f32 0.18741608, %v117_v4  ;;  %v104_v18 = vor.u32 1.1754944e-38, %v103_v9 }
  0xa6   :  { %vm102_vm4 = vcmp.eq.f32.partialorder %v101_v12, 8.507059e+37 }
  0xa7   :  { %v130_v1 = vmul.f32 %v129_v62, %v110_v36  ;;  %v119_v17 = vmul.f32 %v118_v8, %v110_v36 }
  0xa9   :  { %v131_v2 = vadd.f32 1.0, %v130_v1  ;;  %v247_v3 = vpop.eup %246  ;;  %v120_v27 = vadd.f32 1.1283791, %v119_v17 }
  0xaa   :  { %v93_v6 = vmul.f32 %v247_v3, %v91_v59  ;;  %vm98_vm1 = vweird.f32 %v247_v3 }
  0xab   :  { %248 = vrcp.f32 %v131_v2  ;;  %vm99_vm3 = vmor %vm97_vm2, %vm98_vm1  ;;  %v143_v26 = vand.u32 2147483648, %v131_v2  ;;  %v141_v30 = vand.u32 2147483647, %v131_v2  ;;  %vm137_vm6 = vweird.f32 %v131_v2 }
  0xac   :  { %v94_v7 = vsub.f32 1.0, %v93_v6  ;;  %v121_v16 = vmul.f32 %v120_v27, %v380_v29 }
  0xad   :  { %v144_v35 = vor.u32 1.1754944e-38, %v143_v26  ;;  %vm142_vm8 = vcmp.eq.f32.partialorder %v141_v30, 8.507059e+37 }
  0xae   :  { %v95_v11 = vmul.f32 %v247_v3, %v94_v7 }
  0xb0   :  { %v96_v15 = vadd.f32 %v247_v3, %v95_v11 }
  0xb1   :  { %v249_v13 = vpop.eup %248 }
  0xb2   :  { %v133_v19 = vmul.f32 %v249_v13, %v131_v2  ;;  %v100_v22 = vsel %vm99_vm3, %v247_v3, %v96_v15  ;;  %vm138_vm5 = vweird.f32 %v249_v13 }
  0xb3   :  { %v105_v21 = vsel %vm102_vm4, %v104_v18, %v100_v22  ;;  %vm139_vm7 = vmor %vm137_vm6, %vm138_vm5 }
  0xb4   :  { %v134_v23 = vsub.f32 1.0, %v133_v19  ;;  %v106_v24 = vmul.f32 %v105_v21, %v81_v20 }
  0xb6   :  { %v135_v28 = vmul.f32 %v249_v13, %v134_v23  ;;  %v223_v31 = vclamps-f32 %v106_v24, 1.0 }
  0xb8   :  { %v136_v32 = vadd.f32 %v249_v13, %v135_v28  ;;  %v149_v34 = vadd.f32 1.0, %v223_v31 }
  0xba   :  { %v140_v36 = vsel %vm139_vm7, %v249_v13, %v136_v32  ;;  %v151_v37 = vmul.f32 %v149_v34, %v65_v33 }
  0xbb   :  { %v145_v38 = vsel %vm142_vm8, %v144_v35, %v140_v36 }
  0xbc   :  { %v146_v39 = vmul.f32 %v145_v38, %v121_v16  ;;  %193 = vmatmul.f32.vlgmr.msra.gmra.mxu1 %v151_v37 }
  0xbe   :  { %v224_v40 = vclamps-f32 %v146_v39, 1.0 }
  0xc0   :  { %v150_v42 = vadd.f32 1.0, %v224_v40 }
  0xc2   :  { %v152_v43 = vmul.f32 %v150_v42, %v66_v41 }
  0xc4   :  { %196 = vmatmul.f32.vlgmr.msra.gmra.mxu2 %v152_v43 }
 0x139   :  { %v194_v44 = vpop.f32.mrf.mxu1 }
 0x13a   :  { %v195_v45 = vadd.f32 %v245_v14, %v194_v44 }
 0x13c   :  { %201 = vst.msk [vmem:[#allocation3] sm:$0xff] %vm200_vm9, %v195_v45 }
 0x147   :  { %v197_v29 = vpop.f32.mrf.mxu2 }
 0x148   :  { %v198_v25 = vadd.f32 %v245_v14, %v197_v29 }
 0x14a   :  { %202 = vst.msk [vmem:[#allocation3 + $0x8] sm:$0xff] %vm200_vm9, %v198_v25 }
 0x14b   :  { %215 = dma.vmem_to_hbm [thread:$0]  %s208_s11, 256, %s210_s14, [#allocation4], %s277_s15, %s277_s15, %s278_s16  }
 0x14c   :  { %274 = dma.done.wait [#allocation4], 256  }
 0x14d   :  { %275 = vsyncadd [#allocation4], 4294967040 }
 0x14e   :  { %220 = vsyncpa [#allocation4], 1 }

// kernel: tpu_custom_call.1
= control target key start
LH: loop header
LB: loop body
LE: loop exit
PB: predicated region body
PF: predicated region fallthrough
CT: control target
= control target key end

     0   :  { %s414_s0 = inlined_call_operand.vmem [shape: f32[16,32], index: 0, kind: input, shape index: {}]   ;;  %s415_s1 = inlined_call_operand.vmem [shape: f32[32,128], index: 1, kind: input, shape index: {}]   ;;  %s416_s2 = inlined_call_operand.vmem [shape: f32[1,128], index: 2, kind: input, shape index: {}]   ;;  %s417_s3 = inlined_call_operand.vmem [shape: f32[128,64], index: 3, kind: input, shape index: {}]   ;;  %s418_s4 = inlined_call_operand.vmem [shape: f32[1,64], index: 4, kind: input, shape index: {}]   ;;  %s419_s5 = inlined_call_operand.hbm [shape: f32[16,64], index: 5, kind: output, shape index: {}]  }
   0x1   :  { %v30_v0 = vld [vmem:[%s415_s1 + $0x18] sm:$0xff]  ;;  %v29_v1 = vld [vmem:[%s415_s1 + $0x10] sm:$0xff]  ;;  %v28_v2 = vld [vmem:[%s415_s1 + $0x8] sm:$0xff] }
   0x2   :  { %54 = vmatpush.msra.mxu0 %v30_v0 }
   0x4   :  { %55 = vmatpush.msra.mxu0 %v29_v1 }
   0x5   :  { %10 = vsyncpa [#allocation4], 0  ;;  %v27_v3 = vld [vmem:[%s415_s1] sm:$0xff]  ;;  %vm35_vm0 = vcmask 261120   ;;  %v26_v5 = vld [vmem:[%s414_s0 + $0x8] sm:$0xff]  ;;  %vm200_vm9 = vcmask 523264  }
   0x6   :  { %56 = vmatpush.msra.mxu0 %v28_v2  ;;  %v25_v4 = vld [vmem:[%s414_s0] sm:$0xff]  ;;  %v172_v6 = vld [vmem:[%s417_s3 + $0x78] sm:$0xff]  ;;  %v171_v7 = vld [vmem:[%s417_s3 + $0x70] sm:$0xff]  ;;  %s276_s10 = smov [#allocation3]   ;;  %s209_s14 = sshll.u32 %s419_s5, 4  ;;  %s210_s14 = int_to_ptr.hbm [resolvable:$true] %s209_s14 }
   0x7   :  { %177 = vmatpush.msra.mxu1 %v172_v6  ;;  %225 = vmatpush.msra.mxu2 %v172_v6  ;;  %v170_v8 = vld [vmem:[%s417_s3 + $0x68] sm:$0xff]  ;;  %v169_v9 = vld [vmem:[%s417_s3 + $0x60] sm:$0xff]  ;;  %v168_v11 = vld [vmem:[%s417_s3 + $0x58] sm:$0xff]  ;;  %s207_s11 = sshll.u32 %s276_s10, 4  ;;  %s277_s15 = smov 128   ;;  %s208_s11 = int_to_ptr.vmem [resolvable:$true] %s207_s11 }
   0x8   :  { %57 = vmatpush.msra.mxu0 %v27_v3  ;;  %v244_v10 = vld [vmem:[%s416_s2] ss:$0 sm:$0xff]  ;;  %v167_v13 = vld [vmem:[%s417_s3 + $0x50] sm:$0xff]  ;;  %v166_v15 = vld [vmem:[%s417_s3 + $0x48] sm:$0xff]  ;;  %s278_s16 = smov 8  }
   0x9   :  { %221 = vmatmul.msk.f32.vlgmr.msra.gmra.mxu0 %vm35_vm0, %v25_v4  ;;  %178 = vmatpush.msra.mxu1 %v171_v7  ;;  %v165_v17 = vld [vmem:[%s417_s3 + $0x40] sm:$0xff]  ;;  %v164_v19 = vld [vmem:[%s417_s3 + $0x38] sm:$0xff]  ;;  %v163_v20 = vld [vmem:[%s417_s3 + $0x30] sm:$0xff] }
   0xa   :  { %226 = vmatpush.msra.mxu2 %v171_v7  ;;  %v162_v23 = vld [vmem:[%s417_s3 + $0x28] sm:$0xff]  ;;  %v161_v27 = vld [vmem:[%s417_s3 + $0x20] sm:$0xff]  ;;  %v160_v30 = vld [vmem:[%s417_s3 + $0x18] sm:$0xff] }
   0xb   :  { %179 = vmatpush.msra.mxu1 %v170_v8  ;;  %v159_v34 = vld [vmem:[%s417_s3 + $0x10] sm:$0xff]  ;;  %v158_v37 = vld [vmem:[%s417_s3 + $0x8] sm:$0xff]  ;;  %v157_v42 = vld [vmem:[%s417_s3] sm:$0xff] }
   0xc   :  { %227 = vmatpush.msra.mxu2 %v170_v8 }
   0xd   :  { %180 = vmatpush.msra.mxu1 %v169_v9 }
   0xe   :  { %228 = vmatpush.msra.mxu2 %v169_v9 }
   0xf   :  { %181 = vmatpush.msra.mxu1 %v168_v11 }
  0x10   :  { %229 = vmatpush.msra.mxu2 %v168_v11 }
  0x11   :  { %222 = vmatmul.msk.f32.gmra.mxu0 %vm35_vm0, %v26_v5  ;;  %182 = vmatpush.msra.mxu1 %v167_v13 }
  0x12   :  { %230 = vmatpush.msra.mxu2 %v167_v13 }
  0x13   :  { %183 = vmatpush.msra.mxu1 %v166_v15 }
  0x14   :  { %231 = vmatpush.msra.mxu2 %v166_v15 }
  0x15   :  { %184 = vmatpush.msra.mxu1 %v165_v17 }
  0x16   :  { %232 = vmatpush.msra.mxu2 %v165_v17 }
  0x17   :  { %185 = vmatpush.msra.mxu1 %v164_v19 }
  0x18   :  { %233 = vmatpush.msra.mxu2 %v164_v19 }
  0x19   :  { %186 = vmatpush.msra.mxu1 %v163_v20 }
  0x1a   :  { %234 = vmatpush.msra.mxu2 %v163_v20 }
  0x1b   :  { %187 = vmatpush.msra.mxu1 %v162_v23 }
  0x1c   :  { %235 = vmatpush.msra.mxu2 %v162_v23 }
  0x1d   :  { %188 = vmatpush.msra.mxu1 %v161_v27 }
  0x1e   :  { %236 = vmatpush.msra.mxu2 %v161_v27 }
  0x1f   :  { %189 = vmatpush.msra.mxu1 %v160_v30 }
  0x20   :  { %237 = vmatpush.msra.mxu2 %v160_v30 }
  0x21   :  { %190 = vmatpush.msra.mxu1 %v159_v34 }
  0x22   :  { %238 = vmatpush.msra.mxu2 %v159_v34 }
  0x23   :  { %191 = vmatpush.msra.mxu1 %v158_v37 }
  0x24   :  { %239 = vmatpush.msra.mxu2 %v158_v37 }
  0x25   :  { %192 = vmatpush.msra.mxu1 %v157_v42 }
  0x26   :  { %240 = vmatpush.msra.mxu2 %v157_v42 }
  0x86   :  { %v59_v12 = vpop.f32.mrf.mxu0 }
  0x87   :  { %v348_v14 = vadd.f32 %v244_v10, %v59_v12 }
  0x89   :  { %v354_v16 = vmul.f32 0.70710677, %v348_v14 }
  0x8b   :  { %v69_v18 = vmul.f32 %v354_v16, %v354_v16 }
  0x8d   :  { %v367_v21 = vmin.f32 %v69_v18, 16.0 }
  0x8e   :  { %v62_v22 = vpop.f32.mrf.mxu0 }
  0x8f   :  { %v71_v24 = vmul.f32 2.1237322e-06, %v367_v21  ;;  %v373_v25 = vadd.f32 %v244_v10, %v62_v22  ;;  %v82_v26 = vmul.f32 3.8918573e-05, %v367_v21 }
  0x91   :  { %v72_v28 = vadd.f32 0.00028619796, %v71_v24  ;;  %v380_v29 = vmul.f32 0.70710677, %v373_v25  ;;  %v83_v31 = vadd.f32 0.001143296, %v82_v26 }
  0x93   :  { %v73_v32 = vmul.f32 %v72_v28, %v367_v21  ;;  %v109_v33 = vmul.f32 %v380_v29, %v380_v29  ;;  %v84_v35 = vmul.f32 %v83_v31, %v367_v21 }
  0x95   :  { %v110_v36 = vmin.f32 %v109_v33, 16.0  ;;  %v85_v38 = vadd.f32 0.014752088, %v84_v35  ;;  %v74_v39 = vadd.f32 0.0036580483, %v73_v32  ;;  %v65_v33 = vmul.f32 0.5, %v348_v14 }
  0x96   :  { %v245_v14 = vld [vmem:[%s418_s4] ss:$0 sm:$0xff] }
  0x97   :  { %v111_v40 = vmul.f32 2.1237322e-06, %v110_v36  ;;  %v122_v41 = vmul.f32 3.8918573e-05, %v110_v36  ;;  %v86_v43 = vmul.f32 %v85_v38, %v367_v21  ;;  %v75_v47 = vmul.f32 %v74_v39, %v367_v21 }
  0x99   :  { %v112_v44 = vadd.f32 0.00028619796, %v111_v40  ;;  %v123_v45 = vadd.f32 0.001143296, %v122_v41  ;;  %v87_v46 = vadd.f32 0.112945676, %v86_v43 }
  0x9a   :  { %v76_v54 = vadd.f32 0.05243302, %v75_v47  ;;  %v66_v41 = vmul.f32 0.5, %v373_v25 }
  0x9b   :  { %v113_v48 = vmul.f32 %v112_v44, %v110_v36  ;;  %v124_v49 = vmul.f32 %v123_v45, %v110_v36  ;;  %v88_v50 = vmul.f32 %v87_v46, %v367_v21 }
  0x9c   :  { %v77_v60 = vmul.f32 %v76_v54, %v367_v21 }
  0x9d   :  { %v125_v51 = vadd.f32 0.014752088, %v124_v49  ;;  %v114_v52 = vadd.f32 0.0036580483, %v113_v48  ;;  %v89_v53 = vadd.f32 0.4994258, %v88_v50 }
  0x9e   :  { %v78_v0 = vadd.f32 0.18741608, %v77_v60 }
  0x9f   :  { %v126_v55 = vmul.f32 %v125_v51, %v110_v36  ;;  %v90_v56 = vmul.f32 %v89_v53, %v367_v21  ;;  %v115_v58 = vmul.f32 %v114_v52, %v110_v36 }
  0xa0   :  { %v79_v5 = vmul.f32 %v78_v0, %v367_v21 }
  0xa1   :  { %v127_v57 = vadd.f32 0.112945676, %v126_v55  ;;  %v91_v59 = vadd.f32 1.0, %v90_v56  ;;  %v116_v63 = vadd.f32 0.05243302, %v115_v58 }
  0xa2   :  { %v80_v10 = vadd.f32 1.1283791, %v79_v5 }
  0xa3   :  { %v128_v61 = vmul.f32 %v127_v57, %v110_v36  ;;  %246 = vrcp.f32 %v91_v59  ;;  %v117_v4 = vmul.f32 %v116_v63, %v110_v36  ;;  %v103_v9 = vand.u32 2147483648, %v91_v59 }
  0xa4   :  { %v101_v12 = vand.u32 2147483647, %v91_v59  ;;  %vm97_vm2 = vweird.f32 %v91_v59  ;;  %v81_v20 = vmul.f32 %v80_v10, %v354_v16 }
  0xa5   :  { %v129_v62 = vadd.f32 0.4994258, %v128_v61  ;;  %v118_v8 = vadd.f32 0.18741608, %v117_v4  ;;  %v104_v18 = vor.u32 1.1754944e-38, %v103_v9 }
  0xa6   :  { %vm102_vm4 = vcmp.eq.f32.partialorder %v101_v12, 8.507059e+37 }
  0xa7   :  { %v130_v1 = vmul.f32 %v129_v62, %v110_v36  ;;  %v119_v17 = vmul.f32 %v118_v8, %v110_v36 }
  0xa9   :  { %v131_v2 = vadd.f32 1.0, %v130_v1  ;;  %v247_v3 = vpop.eup %246  ;;  %v120_v27 = vadd.f32 1.1283791, %v119_v17 }
  0xaa   :  { %v93_v6 = vmul.f32 %v247_v3, %v91_v59  ;;  %vm98_vm1 = vweird.f32 %v247_v3 }
  0xab   :  { %248 = vrcp.f32 %v131_v2  ;;  %vm99_vm3 = vmor %vm97_vm2, %vm98_vm1  ;;  %v143_v26 = vand.u32 2147483648, %v131_v2  ;;  %v141_v30 = vand.u32 2147483647, %v131_v2  ;;  %vm137_vm6 = vweird.f32 %v131_v2 }
  0xac   :  { %v94_v7 = vsub.f32 1.0, %v93_v6  ;;  %v121_v16 = vmul.f32 %v120_v27, %v380_v29 }
  0xad   :  { %v144_v35 = vor.u32 1.1754944e-38, %v143_v26  ;;  %vm142_vm8 = vcmp.eq.f32.partialorder %v141_v30, 8.507059e+37 }
  0xae   :  { %v95_v11 = vmul.f32 %v247_v3, %v94_v7 }
  0xb0   :  { %v96_v15 = vadd.f32 %v247_v3, %v95_v11 }
  0xb1   :  { %v249_v13 = vpop.eup %248 }
  0xb2   :  { %v133_v19 = vmul.f32 %v249_v13, %v131_v2  ;;  %v100_v22 = vsel %vm99_vm3, %v247_v3, %v96_v15  ;;  %vm138_vm5 = vweird.f32 %v249_v13 }
  0xb3   :  { %v105_v21 = vsel %vm102_vm4, %v104_v18, %v100_v22  ;;  %vm139_vm7 = vmor %vm137_vm6, %vm138_vm5 }
  0xb4   :  { %v134_v23 = vsub.f32 1.0, %v133_v19  ;;  %v106_v24 = vmul.f32 %v105_v21, %v81_v20 }
  0xb6   :  { %v135_v28 = vmul.f32 %v249_v13, %v134_v23  ;;  %v223_v31 = vclamps-f32 %v106_v24, 1.0 }
  0xb8   :  { %v136_v32 = vadd.f32 %v249_v13, %v135_v28  ;;  %v149_v34 = vadd.f32 1.0, %v223_v31 }
  0xba   :  { %v140_v36 = vsel %vm139_vm7, %v249_v13, %v136_v32  ;;  %v151_v37 = vmul.f32 %v149_v34, %v65_v33 }
  0xbb   :  { %v145_v38 = vsel %vm142_vm8, %v144_v35, %v140_v36 }
  0xbc   :  { %v146_v39 = vmul.f32 %v145_v38, %v121_v16  ;;  %193 = vmatmul.f32.vlgmr.msra.gmra.mxu1 %v151_v37 }
  0xbe   :  { %v224_v40 = vclamps-f32 %v146_v39, 1.0 }
  0xc0   :  { %v150_v42 = vadd.f32 1.0, %v224_v40 }
  0xc2   :  { %v152_v43 = vmul.f32 %v150_v42, %v66_v41 }
  0xc4   :  { %196 = vmatmul.f32.vlgmr.msra.gmra.mxu2 %v152_v43 }
 0x139   :  { %v194_v44 = vpop.f32.mrf.mxu1 }
 0x13a   :  { %v195_v45 = vadd.f32 %v245_v14, %v194_v44 }
 0x13c   :  { %201 = vst.msk [vmem:[#allocation3] sm:$0xff] %vm200_vm9, %v195_v45 }
 0x147   :  { %v197_v29 = vpop.f32.mrf.mxu2 }
 0x148   :  { %v198_v25 = vadd.f32 %v245_v14, %v197_v29 }
 0x14a   :  { %202 = vst.msk [vmem:[#allocation3 + $0x8] sm:$0xff] %vm200_vm9, %v198_v25 }
 0x14b   :  { %215 = dma.vmem_to_hbm [thread:$0]  %s208_s11, 256, %s210_s14, [#allocation4], %s277_s15, %s277_s15, %s278_s16  }
 0x14c   :  { %274 = dma.done.wait [#allocation4], 256  }
 0x14d   :  { %275 = vsyncadd [#allocation4], 4294967040 }
 0x14e   :  { %220 = vsyncpa [#allocation4], 1 }

</bundles_post_ra>
